<compile_context>
chip_gen: v5e
topology: v5e:2x2
jax: 0.10.0
libtpu: 0.0.40
codegen_flags: <defaults>
</compile_context>

<pallas_src>
import functools

import jax
import jax.numpy as jnp
from jax import lax
from jax.experimental import pallas as pl
from jax.experimental.pallas import tpu as pltpu


def _diag_sums(mat, b):
    """Diagonal of a (b, b) matrix as (b, 1) and (1, b), no gather/transpose."""
    eye = (lax.broadcasted_iota(jnp.int32, (b, b), 0) ==
           lax.broadcasted_iota(jnp.int32, (b, b), 1))
    diag_only = jnp.where(eye, mat, 0.0)
    col = jnp.sum(diag_only, axis=1, keepdims=True)   # (b, 1)
    row = jnp.sum(diag_only, axis=0, keepdims=True)   # (1, b)
    return col, row


def _diversity_loss_kernel(noises_ref, layer_ref, o_ref, nd_ref, acc_ref,
                           *, metric, b, d_layer, d_noise, tk, ragged):
    k = pl.program_id(0)
    nk = pl.num_programs(0)

    @pl.when(k == 0)
    def _init():
        acc_ref[...] = jnp.zeros_like(acc_ref)
        # Noise pairwise L2 distance (always 'l2'); computed once, kept in VMEM.
        n = noises_ref[...].astype(jnp.float32)                       # (B, Dn)
        ng = lax.dot_general(n, n, (((1,), (1,)), ((), ())),
                             preferred_element_type=jnp.float32)      # (B, B)
        nsq_col, nsq_row = _diag_sums(ng, b)
        nd = jnp.maximum(nsq_col + nsq_row - 2.0 * ng, 0.0)
        nd_ref[...] = nd * jnp.float32(1.0 / d_noise)

    tile = layer_ref[...]                                             # (B, TK)

    valid = None
    if ragged:
        # Mask the (only possibly) ragged lanes of the boundary tile: the
        # block may extend past d_layer and those lanes hold undefined data.
        col = lax.broadcasted_iota(jnp.int32, (b, tk), 1)
        valid = (col + k * tk) < d_layer
        tile = jnp.where(valid, tile, jnp.zeros_like(tile))

    if metric in ("l2", "cosine"):
        # Partial Gram matrix on the MXU (contraction (1,1): A @ A^T without an
        # explicit transpose); masked lanes contribute 0.
        acc_ref[...] += lax.dot_general(tile, tile, (((1,), (1,)), ((), ())),
                                        preferred_element_type=jnp.float32)
    else:  # 'l1' — no matmul form; accumulate per-tile column sums of |diff|.
        col_ids = lax.broadcasted_iota(jnp.int32, (b, b), 1)          # hoisted

        def body(i, carry):
            # NOTE: a stride-0 sublane-broadcast load (pl.ds(i, b, stride=0))
            # would avoid the implicit broadcast; the plain 1-row slice is kept
            # for portability.
            row = layer_ref[pl.ds(i, 1), :]                           # (1, TK)
            if ragged:
                row = jnp.where(valid[0:1, :], row, jnp.zeros_like(row))
            diff = jnp.abs(tile - row)                 # input dtype (bf16 ok)
            part = jnp.sum(diff.astype(jnp.float32), axis=1,
                           keepdims=True)                             # (B, 1)
            return carry + jnp.where(col_ids == i, part, 0.0)

        partial = lax.fori_loop(0, b, body, jnp.zeros((b, b), jnp.float32),
                                unroll=True)
        acc_ref[...] += partial * jnp.float32(1.0 / d_layer)

    @pl.when(k == nk - 1)
    def _finalize():
        acc = acc_ref[...]
        if metric == "l2":
            sq_col, sq_row = _diag_sums(acc, b)
            ld = jnp.maximum(sq_col + sq_row - 2.0 * acc, 0.0)
            ld = ld * jnp.float32(1.0 / d_layer)
        elif metric == "cosine":
            sq_col, sq_row = _diag_sums(acc, b)
            denom = jnp.maximum(jnp.sqrt(sq_col) * jnp.sqrt(sq_row),
                                jnp.float32(1e-8))
            ld = 1.0 - acc / denom
        else:  # 'l1' — already the mean over features
            ld = acc
        total = jnp.sum(nd_ref[...] * ld, keepdims=True)              # (1, 1)
        o_ref[...] = jnp.exp(total * jnp.float32(-1.0 / (b * b)))


def diversity_loss(noises, layer, metric="l2", tile_features=None):
    """Pallas-backed equivalent of DiversityLoss(metric)(noises, layer)."""
    if metric not in ("l1", "l2", "cosine"):
        raise ValueError(metric)
    if layer.ndim > 2:
        layer = layer.reshape(layer.shape[0], -1)     # flatten NCHW -> (B, Dl)
    b, d_layer = layer.shape
    _, d_noise = noises.shape

    # --- Feature-axis tile sizing -------------------------------------------
    # Target ~4 MiB per streamed (B, TK) block (lane-dense, multiple of 128),
    # accounting for sublane padding of B up to 8.  Double-buffered that is
    # ~8 MiB, comfortably inside the 48 MiB VMEM budget below on every
    # generation (v7x has only 64 MiB per core).
    itemsize = jnp.dtype(layer.dtype).itemsize
    sublanes = max(b, 8)
    if tile_features is None:
        target_block_bytes = 4 * 1024 * 1024
        tk = (target_block_bytes // (sublanes * itemsize)) // 128 * 128
        tk = max(tk, 128)
    else:  # explicit override (used in tests to exercise the streaming path)
        tk = max(128, (int(tile_features) // 128) * 128)

    if tk >= d_layer:
        # Single full-width block: block dim == array dim, so the (8, 128)
        # divisibility rule is bypassed and no masking is needed.
        tk = d_layer
        num_k = 1
        ragged = False
    else:
        num_k = pl.cdiv(d_layer, tk)
        ragged = (d_layer % tk) != 0   # last tile masked inside the kernel

    kernel = functools.partial(_diversity_loss_kernel, metric=metric, b=b,
                               d_layer=d_layer, d_noise=d_noise, tk=tk,
                               ragged=ragged)

    out = pl.pallas_call(
        kernel,
        out_shape=jax.ShapeDtypeStruct((1, 1), jnp.float32),
        grid_spec=pltpu.PrefetchScalarGridSpec(
            num_scalar_prefetch=0,
            grid=(num_k,),
            in_specs=[
                # noises: tiny, constant block index -> resident across grid.
                pl.BlockSpec((b, d_noise), lambda k: (0, 0)),
                # layer: streamed over the feature axis (double-buffered DMA).
                pl.BlockSpec((b, tk), lambda k: (0, k)),
            ],
            out_specs=pl.BlockSpec((1, 1), lambda k: (0, 0)),
            scratch_shapes=[
                pltpu.VMEM((b, b), jnp.float32),   # noise pairwise distance
                pltpu.VMEM((b, b), jnp.float32),   # Gram / L1 accumulator
            ],
        ),
        compiler_params=pltpu.CompilerParams(
            dimension_semantics=("arbitrary",),
            vmem_limit_bytes=48 * 1024 * 1024,
        ),
    )(noises, layer)
    return out[0, 0]


def _reference_loss(noises, layer, metric):
    """Pure-JAX mirror of the PyTorch module for verification."""
    if layer.ndim > 2:
        layer = layer.reshape(layer.shape[0], -1)

    def pairwise(t, how):
        t1 = t[None, :, :]   # t1[i, j, k] = t[j, k]  (torch expand)
        t2 = t[:, None, :]   # t2[i, j, k] = t[i, k]  (torch unsqueeze)
        if how == "l1":
            return jnp.mean(jnp.abs(t1 - t2), axis=2)
        if how == "l2":
            return jnp.mean((t1 - t2) ** 2, axis=2)
        if how == "cosine":
            dots = jnp.sum(t1 * t2, axis=2)
            n = jnp.sqrt(jnp.sum(t * t, axis=1))
            denom = jnp.maximum(n[None, :] * n[:, None], 1e-8)
            return 1.0 - dots / denom
        raise ValueError(how)

    layer_dist = pairwise(layer, metric)
    noise_dist = pairwise(noises, "l2")
    return jnp.exp(jnp.mean(-noise_dist * layer_dist))


if __name__ == "__main__":
    key = jax.random.PRNGKey(0)
    k_noise, k_layer1, k_layer2, k_layer3 = jax.random.split(key, 4)

    # Small shapes consistent with the module: noises (B, Dn), layer NCHW.
    B, DN = 4, 8
    noises = jax.random.normal(k_noise, (B, DN), dtype=jnp.float32)
    # Dl = 1024 and Dl = 4096 -> single full-width block path.
    layer_small = jax.random.normal(k_layer1, (B, 4, 16, 16), dtype=jnp.float32)
    layer_big = jax.random.normal(k_layer2, (B, 16, 16, 16), dtype=jnp.float32)
    # Dl = 1000 with a forced 256-wide tile -> multi-tile streaming + ragged
    # in-kernel masking path.
    layer_ragged = jax.random.normal(k_layer3, (B, 10, 10, 10),
                                     dtype=jnp.float32)

    cases = [(layer_small, None), (layer_big, None), (layer_ragged, 256)]
    ok = True
    for metric in ("l1", "l2", "cosine"):
        for layer, tile in cases:
            got = jax.block_until_ready(
                diversity_loss(noises, layer, metric=metric,
                               tile_features=tile))
            want = jax.block_until_ready(
                _reference_loss(noises, layer, metric))
            if not jnp.allclose(got, want, rtol=1e-4, atol=1e-6):
                ok = False
                d = layer.size // B
                print(f"mismatch metric={metric} d={d} tile={tile}: "
                      f"{got} vs {want}")

    if ok:
        print("KERNEL_OK")
</pallas_src>

<mosaic_0001>
module attributes {stable_mosaic.version = 11 : i64} {
  func.func @_diversity_loss_kernel(%arg0: i32, %arg1: memref<4x8xf32, #tpu.memory_space<vmem>>, %arg2: memref<4x1024xf32, #tpu.memory_space<vmem>>, %arg3: memref<1x1xf32, #tpu.memory_space<vmem>>, %arg4: memref<4x4xf32, #tpu.memory_space<vmem>>, %arg5: memref<4x4xf32, #tpu.memory_space<vmem>>) attributes {dimension_semantics = [#tpu.dimension_semantics<arbitrary>], iteration_bounds = array<i64: 1>, scalar_prefetch = 0 : i64, scratch_operands = 2 : i64, tpu.core_type = #tpu.core_type<tc>, window_params = [{pipeline_mode = #tpu.pipeline_mode<synchronous>, transform_indices = @transform_0, window_bounds = array<i64: 4, 8>}, {transform_indices = @transform_1, window_bounds = array<i64: 4, 1024>}, {pipeline_mode = #tpu.pipeline_mode<synchronous>, transform_indices = @transform_2, window_bounds = array<i64: 1, 1>}]} {
    %c0_i32 = arith.constant 0 : i32
    %0 = arith.cmpi eq, %arg0, %c0_i32 : i32
    %1 = arith.extui %0 : i1 to i32
    %c0_i32_0 = arith.constant 0 : i32
    %2 = arith.cmpi ne, %1, %c0_i32_0 : i32
    scf.if %2 {
      %cst_22 = arith.constant 0.000000e+00 : f32
      %70 = vector.broadcast %cst_22 : f32 to vector<4x4xf32>
      %c0_23 = arith.constant 0 : index
      %c0_24 = arith.constant 0 : index
      %71 = vector.load %arg5[%c0_23, %c0_24] : memref<4x4xf32, #tpu.memory_space<vmem>>, vector<4x4xf32>
      tpu.vector_store %arg5[%c0_23, %c0_24], %70 {strides = array<i32>} : memref<4x4xf32, #tpu.memory_space<vmem>>, vector<4x4xf32>,
      %c0_25 = arith.constant 0 : index
      %c0_26 = arith.constant 0 : index
      %72 = vector.load %arg1[%c0_25, %c0_26] : memref<4x8xf32, #tpu.memory_space<vmem>>, vector<4x8xf32>
      %cst_27 = arith.constant dense<0.000000e+00> : vector<4x4xf32>
      %73 = tpu.matmul %72, %72, %cst_27 {dimension_numbers = #tpu.dot_dimension_numbers<[1], [1], [0], [0], [0, 0, 1, 0], [], []>} : vector<4x8xf32>, vector<4x8xf32>, vector<4x4xf32> -> vector<4x4xf32>
      %74 = tpu.iota {dimensions = array<i32: 0>} : vector<4x4xi32>
      %75 = tpu.iota {dimensions = array<i32: 1>} : vector<4x4xi32>
      %76 = arith.cmpi eq, %74, %75 : vector<4x4xi32>
      %cst_28 = arith.constant 0.000000e+00 : f32
      %77 = vector.broadcast %cst_28 : f32 to vector<4x4xf32>
      %78 = arith.select %76, %73, %77 : vector<4x4xi1>, vector<4x4xf32>
      %cst_29 = arith.constant dense<0.000000e+00> : vector<4xf32>
      %79 = vector.multi_reduction <add>, %78, %cst_29 [1] : vector<4x4xf32> to vector<4xf32>
      %80 = vector.shape_cast %79 : vector<4xf32> to vector<4x1xf32>
      %cst_30 = arith.constant dense<0.000000e+00> : vector<4xf32>
      %81 = vector.multi_reduction <add>, %78, %cst_30 [0] : vector<4x4xf32> to vector<4xf32>
      %82 = vector.shape_cast %81 : vector<4xf32> to vector<1x4xf32>
      %83 = vector.broadcast %80 : vector<4x1xf32> to vector<4x4xf32>
      %84 = vector.broadcast %82 : vector<1x4xf32> to vector<4x4xf32>
      %85 = arith.addf %83, %84 : vector<4x4xf32>
      %cst_31 = arith.constant 2.000000e+00 : f32
      %86 = vector.broadcast %cst_31 : f32 to vector<4x4xf32>
      %87 = arith.mulf %86, %73 : vector<4x4xf32>
      %88 = arith.subf %85, %87 : vector<4x4xf32>
      %cst_32 = arith.constant 0.000000e+00 : f32
      %89 = vector.broadcast %cst_32 : f32 to vector<4x4xf32>
      %90 = arith.maximumf %88, %89 : vector<4x4xf32>
      %cst_33 = arith.constant 1.250000e-01 : f32
      %91 = vector.broadcast %cst_33 : f32 to vector<4x4xf32>
      %92 = arith.mulf %90, %91 : vector<4x4xf32>
      %c0_34 = arith.constant 0 : index
      %c0_35 = arith.constant 0 : index
      %93 = vector.load %arg4[%c0_34, %c0_35] : memref<4x4xf32, #tpu.memory_space<vmem>>, vector<4x4xf32>
      tpu.vector_store %arg4[%c0_34, %c0_35], %92 {strides = array<i32>} : memref<4x4xf32, #tpu.memory_space<vmem>>, vector<4x4xf32>,
    } else {
    }
    %c0 = arith.constant 0 : index
    %c0_1 = arith.constant 0 : index
    %3 = vector.load %arg2[%c0, %c0_1] : memref<4x1024xf32, #tpu.memory_space<vmem>>, vector<4x1024xf32>
    %4 = tpu.iota {dimensions = array<i32: 1>} : vector<4x4xi32>
    %cst = arith.constant 0.000000e+00 : f32
    %5 = vector.broadcast %cst : f32 to vector<4x4xf32>
    %c0_i32_2 = arith.constant 0 : i32
    %6 = arith.index_cast %c0_i32_2 : i32 to index
    %c0_3 = arith.constant 0 : index
    %7 = vector.load %arg2[%6, %c0_3] : memref<4x1024xf32, #tpu.memory_space<vmem>>, vector<1x1024xf32>
    %8 = vector.broadcast %7 : vector<1x1024xf32> to vector<4x1024xf32>
    %9 = arith.subf %3, %8 : vector<4x1024xf32>
    %10 = math.absf %9 : vector<4x1024xf32>
    %cst_4 = arith.constant dense<0.000000e+00> : vector<4xf32>
    %11 = vector.multi_reduction <add>, %10, %cst_4 [1] : vector<4x1024xf32> to vector<4xf32>
    %12 = vector.shape_cast %11 : vector<4xf32> to vector<4x1xf32>
    %13 = vector.broadcast %c0_i32_2 : i32 to vector<4x4xi32>
    %14 = arith.cmpi eq, %4, %13 : vector<4x4xi32>
    %cst_5 = arith.constant 0.000000e+00 : f32
    %15 = vector.shape_cast %12 : vector<4x1xf32> to vector<4x1xf32>
    %16 = vector.broadcast %15 : vector<4x1xf32> to vector<4x4xf32>
    %17 = vector.broadcast %cst_5 : f32 to vector<4x4xf32>
    %18 = arith.select %14, %16, %17 : vector<4x4xi1>, vector<4x4xf32>
    %19 = arith.addf %5, %18 : vector<4x4xf32>
    %c1_i32 = arith.constant 1 : i32
    %20 = arith.index_cast %c1_i32 : i32 to index
    %c0_6 = arith.constant 0 : index
    %21 = vector.load %arg2[%20, %c0_6] : memref<4x1024xf32, #tpu.memory_space<vmem>>, vector<1x1024xf32>
    %22 = vector.broadcast %21 : vector<1x1024xf32> to vector<4x1024xf32>
    %23 = arith.subf %3, %22 : vector<4x1024xf32>
    %24 = math.absf %23 : vector<4x1024xf32>
    %cst_7 = arith.constant dense<0.000000e+00> : vector<4xf32>
    %25 = vector.multi_reduction <add>, %24, %cst_7 [1] : vector<4x1024xf32> to vector<4xf32>
    %26 = vector.shape_cast %25 : vector<4xf32> to vector<4x1xf32>
    %27 = vector.broadcast %c1_i32 : i32 to vector<4x4xi32>
    %28 = arith.cmpi eq, %4, %27 : vector<4x4xi32>
    %cst_8 = arith.constant 0.000000e+00 : f32
    %29 = vector.shape_cast %26 : vector<4x1xf32> to vector<4x1xf32>
    %30 = vector.broadcast %29 : vector<4x1xf32> to vector<4x4xf32>
    %31 = vector.broadcast %cst_8 : f32 to vector<4x4xf32>
    %32 = arith.select %28, %30, %31 : vector<4x4xi1>, vector<4x4xf32>
    %33 = arith.addf %19, %32 : vector<4x4xf32>
    %c2_i32 = arith.constant 2 : i32
    %34 = arith.index_cast %c2_i32 : i32 to index
    %c0_9 = arith.constant 0 : index
    %35 = vector.load %arg2[%34, %c0_9] : memref<4x1024xf32, #tpu.memory_space<vmem>>, vector<1x1024xf32>
    %36 = vector.broadcast %35 : vector<1x1024xf32> to vector<4x1024xf32>
    %37 = arith.subf %3, %36 : vector<4x1024xf32>
    %38 = math.absf %37 : vector<4x1024xf32>
    %cst_10 = arith.constant dense<0.000000e+00> : vector<4xf32>
    %39 = vector.multi_reduction <add>, %38, %cst_10 [1] : vector<4x1024xf32> to vector<4xf32>
    %40 = vector.shape_cast %39 : vector<4xf32> to vector<4x1xf32>
    %41 = vector.broadcast %c2_i32 : i32 to vector<4x4xi32>
    %42 = arith.cmpi eq, %4, %41 : vector<4x4xi32>
    %cst_11 = arith.constant 0.000000e+00 : f32
    %43 = vector.shape_cast %40 : vector<4x1xf32> to vector<4x1xf32>
    %44 = vector.broadcast %43 : vector<4x1xf32> to vector<4x4xf32>
    %45 = vector.broadcast %cst_11 : f32 to vector<4x4xf32>
    %46 = arith.select %42, %44, %45 : vector<4x4xi1>, vector<4x4xf32>
    %47 = arith.addf %33, %46 : vector<4x4xf32>
    %c3_i32 = arith.constant 3 : i32
    %48 = arith.index_cast %c3_i32 : i32 to index
    %c0_12 = arith.constant 0 : index
    %49 = vector.load %arg2[%48, %c0_12] : memref<4x1024xf32, #tpu.memory_space<vmem>>, vector<1x1024xf32>
    %50 = vector.broadcast %49 : vector<1x1024xf32> to vector<4x1024xf32>
    %51 = arith.subf %3, %50 : vector<4x1024xf32>
    %52 = math.absf %51 : vector<4x1024xf32>
    %cst_13 = arith.constant dense<0.000000e+00> : vector<4xf32>
    %53 = vector.multi_reduction <add>, %52, %cst_13 [1] : vector<4x1024xf32> to vector<4xf32>
    %54 = vector.shape_cast %53 : vector<4xf32> to vector<4x1xf32>
    %55 = vector.broadcast %c3_i32 : i32 to vector<4x4xi32>
    %56 = arith.cmpi eq, %4, %55 : vector<4x4xi32>
    %cst_14 = arith.constant 0.000000e+00 : f32
    %57 = vector.shape_cast %54 : vector<4x1xf32> to vector<4x1xf32>
    %58 = vector.broadcast %57 : vector<4x1xf32> to vector<4x4xf32>
    %59 = vector.broadcast %cst_14 : f32 to vector<4x4xf32>
    %60 = arith.select %56, %58, %59 : vector<4x4xi1>, vector<4x4xf32>
    %61 = arith.addf %47, %60 : vector<4x4xf32>
    %c4_i32 = arith.constant 4 : i32
    %c0_15 = arith.constant 0 : index
    %c0_16 = arith.constant 0 : index
    %62 = vector.load %arg5[%c0_15, %c0_16] : memref<4x4xf32, #tpu.memory_space<vmem>>, vector<4x4xf32>
    %cst_17 = arith.constant 9.765625E-4 : f32
    %63 = vector.broadcast %cst_17 : f32 to vector<4x4xf32>
    %64 = arith.mulf %61, %63 : vector<4x4xf32>
    %65 = arith.addf %62, %64 : vector<4x4xf32>
    %c0_18 = arith.constant 0 : index
    %c0_19 = arith.constant 0 : index
    %66 = vector.load %arg5[%c0_18, %c0_19] : memref<4x4xf32, #tpu.memory_space<vmem>>, vector<4x4xf32>
    tpu.vector_store %arg5[%c0_18, %c0_19], %65 {strides = array<i32>} : memref<4x4xf32, #tpu.memory_space<vmem>>, vector<4x4xf32>,
    %c0_i32_20 = arith.constant 0 : i32
    %67 = arith.cmpi eq, %arg0, %c0_i32_20 : i32
    %68 = arith.extui %67 : i1 to i32
    %c0_i32_21 = arith.constant 0 : i32
    %69 = arith.cmpi ne, %68, %c0_i32_21 : i32
    scf.if %69 {
      %c0_22 = arith.constant 0 : index
      %c0_23 = arith.constant 0 : index
      %70 = vector.load %arg5[%c0_22, %c0_23] : memref<4x4xf32, #tpu.memory_space<vmem>>, vector<4x4xf32>
      %c0_24 = arith.constant 0 : index
      %c0_25 = arith.constant 0 : index
      %71 = vector.load %arg4[%c0_24, %c0_25] : memref<4x4xf32, #tpu.memory_space<vmem>>, vector<4x4xf32>
      %72 = arith.mulf %71, %70 : vector<4x4xf32>
      %73 = vector.shape_cast %72 : vector<4x4xf32> to vector<1x4x4xf32>
      %cst_26 = arith.constant dense<0.000000e+00> : vector<1xf32>
      %74 = vector.multi_reduction <add>, %73, %cst_26 [1, 2] : vector<1x4x4xf32> to vector<1xf32>
      %75 = vector.shape_cast %74 : vector<1xf32> to vector<1x1x1xf32>
      %76 = vector.extract %75[0, 0, 0] : f32 from vector<1x1x1xf32>
      %77 = vector.broadcast %76 : f32 to vector<1x1xf32>
      %cst_27 = arith.constant -6.250000e-02 : f32
      %78 = vector.broadcast %cst_27 : f32 to vector<1x1xf32>
      %79 = arith.mulf %77, %78 : vector<1x1xf32>
      %80 = math.exp %79 : vector<1x1xf32>
      %c0_28 = arith.constant 0 : index
      %c0_29 = arith.constant 0 : index
      %81 = vector.load %arg3[%c0_28, %c0_29] : memref<1x1xf32, #tpu.memory_space<vmem>>, vector<1x1xf32>
      tpu.vector_store %arg3[%c0_28, %c0_29], %80 {strides = array<i32>} : memref<1x1xf32, #tpu.memory_space<vmem>>, vector<1x1xf32>,
    } else {
    }
    return
  }
  func.func @transform_0(%arg0: i32) -> (i32, i32) {
    %c0_i32 = arith.constant 0 : i32
    %c0_i32_0 = arith.constant 0 : i32
    %c0_i32_1 = arith.constant 0 : i32
    return %c0_i32, %c0_i32_0 : i32, i32
  }
  func.func @transform_1(%arg0: i32) -> (i32, i32) {
    %c0_i32 = arith.constant 0 : i32
    %c0_i32_0 = arith.constant 0 : i32
    return %c0_i32, %arg0 : i32, i32
  }
  func.func @transform_2(%arg0: i32) -> (i32, i32) {
    %c0_i32 = arith.constant 0 : i32
    %c0_i32_0 = arith.constant 0 : i32
    %c0_i32_1 = arith.constant 0 : i32
    return %c0_i32, %c0_i32_0 : i32, i32
  }
}

</mosaic_0001>

<bundles_post_ra>
// kernel: tpu_custom_call.1
= control target key start
LH: loop header
LB: loop body
LE: loop exit
PB: predicated region body
PF: predicated region fallthrough
CT: control target
= control target key end

     0   :  { %7 = vsyncpa [#allocation5], 0  ;;  %s658_s0 = inlined_call_operand.hbm [shape: f32[4,8], index: 0, kind: input, shape index: {}]   ;;  %s659_s1 = inlined_call_operand.hbm [shape: f32[4,1024], index: 1, kind: input, shape index: {}]   ;;  %s660_s2 = inlined_call_operand.hbm [shape: f32[1,1], index: 2, kind: output, shape index: {}]  }
   0x1   :  { %8 = vsyncpa [#allocation8], 0 }
   0x2   :  { %9 = vsyncpa [#allocation6], 0  ;;  %s15_s11 = sshll.u32 %s658_s0, 4  ;;  %s543_s12 = smov [#allocation4]   ;;  %s16_s11 = int_to_ptr.hbm [resolvable:$true] %s15_s11 }
   0x3   :  { %s17_s13 = sshll.u32 %s543_s12, 4  ;;  %s26_s16 = sshll.u32 %s659_s1, 4  ;;  %s18_s13 = int_to_ptr.vmem [resolvable:$true] %s17_s13  ;;  %s27_s16 = int_to_ptr.hbm [resolvable:$true] %s26_s16 }
   0x4   :  { %20 = dma.hbm_to_vmem [thread:$0]  %s16_s11, 64, %s18_s13, [#allocation5]  }
   0x5   :  { %s544_s17 = smov [#allocation7]  }
   0x6   :  { %s28_s18 = sshll.u32 %s544_s17, 4  ;;  %s29_s18 = int_to_ptr.vmem [resolvable:$true] %s28_s18 }
   0x7   :  { %31 = dma.hbm_to_vmem [thread:$0]  %s27_s16, 512, %s29_s18, [#allocation8]  }
   0x8   :  { %537 = dma.done.wait [#allocation5], 64  }
   0x9   :  { %538 = vsyncadd [#allocation5], 4294967232 }
   0xa   :  { %539 = dma.done.wait [#allocation8], 512  }
   0xb   :  { %540 = vsyncadd [#allocation8], 4294966784  ;;  %vm47_vm0 = vcmask 64512   ;;  %v46_v0 = vld [vmem:[#allocation4] sm:$0xf]  ;;  %vm112_vm1 = vcmask 1043456  }
   0xc   :  { %455 = vmatpush.xpose.msk.msra.mxu0 %vm47_vm0, %v46_v0  ;;  %v98_v1 = vld [vmem:[#allocation7] ss:$4 sm:$0xff]  ;;  %v177_v10 = vld [vmem:[#allocation7 + $0x1] ss:$4 sm:$0xff]  ;;  %v584_v35 = vld [vmem:[#allocation7 + $0x2] ss:$4 sm:$0xff] }
   0xd   :  { %v100_v2 = vperm.slane %v98_v1, 0  ;;  %v101_v3 = vperm.slane %v98_v1, 1  ;;  %v102_v4 = vperm.slane %v98_v1, 2  ;;  %v103_v5 = vperm.slane %v98_v1, 3  ;;  %v568_v11 = vld [vmem:[#allocation7] sm:$0xff]  ;;  %v570_v12 = vld [vmem:[#allocation7 + $0x8] sm:$0xff] }
   0xe   :  { %v104_v6 = vperm.slane %v98_v1, 4  ;;  %v105_v7 = vperm.slane %v98_v1, 5  ;;  %v106_v8 = vperm.slane %v98_v1, 6  ;;  %v107_v9 = vperm.slane %v98_v1, 7  ;;  %v572_v17 = vld [vmem:[#allocation7 + $0x10] sm:$0xff]  ;;  %v574_v18 = vld [vmem:[#allocation7 + $0x18] sm:$0xff] }
   0xf   :  { %456 = vmatmul.msk.f32.vlgmr.msra.gmra.mxu0 %vm47_vm0, %v46_v0  ;;  %v108_v13 = vrot.slane %v101_v3, 4  ;;  %v109_v14 = vrot.slane %v103_v5, 4  ;;  %v179_v15 = vperm.slane %v177_v10, 0  ;;  %v180_v16 = vperm.slane %v177_v10, 1  ;;  %s546_s1 = smov [#allocation9]   ;;  %s444_s22 = sshll.u32 %s660_s2, 4  ;;  %s445_s22 = int_to_ptr.hbm [resolvable:$true] %s444_s22 }
  0x10   :  { %v110_v19 = vrot.slane %v105_v7, 4  ;;  %v111_v20 = vrot.slane %v107_v9, 4  ;;  %v181_v21 = vperm.slane %v177_v10, 2  ;;  %v182_v22 = vperm.slane %v177_v10, 3  ;;  %v333_v9 = vld [vmem:[#allocation7 + $0x3] ss:$4 sm:$0xff] }
  0x11   :  { %v113_v23 = vsel %vm112_vm1, %v100_v2, %v108_v13  ;;  %v114_v24 = vsel %vm112_vm1, %v102_v4, %v109_v14  ;;  %v183_v25 = vperm.slane %v177_v10, 4  ;;  %v184_v26 = vperm.slane %v177_v10, 5  ;;  %s442_s19 = sshll.u32 %s546_s1, 4  ;;  %s443_s19 = int_to_ptr.vmem [resolvable:$true] %s442_s19 }
  0x12   :  { %v115_v27 = vsel %vm112_vm1, %v104_v6, %v110_v19  ;;  %v116_v28 = vsel %vm112_vm1, %v106_v8, %v111_v20  ;;  %v121_v29 = vsub.f32 %v568_v11, %v113_v23  ;;  %v122_v30 = vsub.f32 %v570_v12, %v114_v24 }
  0x13   :  { %v123_v31 = vsub.f32 %v572_v17, %v115_v27  ;;  %v124_v32 = vsub.f32 %v574_v18, %v116_v28  ;;  %v185_v33 = vperm.slane %v177_v10, 6  ;;  %v186_v34 = vperm.slane %v177_v10, 7 }
  0x14   :  { %v125_v36 = vand.u32 2147483647, %v121_v29  ;;  %v126_v37 = vand.u32 2147483647, %v122_v30  ;;  %v187_v38 = vrot.slane %v180_v16, 4  ;;  %v188_v39 = vrot.slane %v182_v22, 4 }
  0x15   :  { %v127_v40 = vand.u32 2147483647, %v123_v31  ;;  %v128_v41 = vand.u32 2147483647, %v124_v32  ;;  %v189_v42 = vrot.slane %v184_v26, 4  ;;  %v190_v43 = vrot.slane %v186_v34, 4 }
  0x16   :  { %133 = vst [vmem:[#allocation1] ss:$2 sm:$0xff] %v125_v36  ;;  %v191_v44 = vsel %vm112_vm1, %v179_v15, %v187_v38  ;;  %v192_v45 = vsel %vm112_vm1, %v181_v21, %v188_v39  ;;  %v258_v52 = vperm.slane %v584_v35, 1  ;;  %v260_v53 = vperm.slane %v584_v35, 3 }
  0x17   :  { %135 = vst [vmem:[#allocation1 + $0x10] ss:$2 sm:$0xff] %v126_v37  ;;  %v193_v46 = vsel %vm112_vm1, %v183_v25, %v189_v42  ;;  %v194_v47 = vsel %vm112_vm1, %v185_v33, %v190_v43  ;;  %v199_v48 = vsub.f32 %v568_v11, %v191_v44  ;;  %v200_v49 = vsub.f32 %v570_v12, %v192_v45 }
  0x18   :  { %137 = vst [vmem:[#allocation1 + $0x20] ss:$2 sm:$0xff] %v127_v40  ;;  %v201_v50 = vsub.f32 %v572_v17, %v193_v46  ;;  %v202_v51 = vsub.f32 %v574_v18, %v194_v47  ;;  %v257_v54 = vperm.slane %v584_v35, 0  ;;  %v259_v57 = vperm.slane %v584_v35, 2 }
  0x19   :  { %139 = vst [vmem:[#allocation1 + $0x30] ss:$2 sm:$0xff] %v128_v41  ;;  %v203_v55 = vand.u32 2147483647, %v199_v48  ;;  %v204_v56 = vand.u32 2147483647, %v200_v49 }
  0x1a   :  { %v262_v58 = vperm.slane %v584_v35, 5  ;;  %v205_v59 = vand.u32 2147483647, %v201_v50  ;;  %v206_v60 = vand.u32 2147483647, %v202_v51  ;;  %v261_v61 = vperm.slane %v584_v35, 4 }
  0x1b   :  { %v263_v62 = vperm.slane %v584_v35, 6  ;;  %v264_v63 = vperm.slane %v584_v35, 7  ;;  %v265_v0 = vrot.slane %v258_v52, 4  ;;  %v266_v1 = vrot.slane %v260_v53, 4 }
  0x1c   :  { %v267_v2 = vrot.slane %v262_v58, 4  ;;  %v335_v26 = vperm.slane %v333_v9, 0  ;;  %v336_v30 = vperm.slane %v333_v9, 1  ;;  %v338_v33 = vperm.slane %v333_v9, 3 }
  0x1d   :  { %v140_v3 = vld.sshfl [vmem:[#allocation1] sm:$0xff pattern:$0x75316420]  ;;  %v141_v4 = vld.sshfl [vmem:[#allocation1 + $0x8] sm:$0xff pattern:$0x75316420]  ;;  %v269_v14 = vsel %vm112_vm1, %v257_v54, %v265_v0  ;;  %v270_v15 = vsel %vm112_vm1, %v259_v57, %v266_v1 }
  0x1e   :  { %v142_v5 = vld.sshfl [vmem:[#allocation1 + $0x10] sm:$0xff pattern:$0x75316420]  ;;  %v143_v6 = vld.sshfl [vmem:[#allocation1 + $0x18] sm:$0xff pattern:$0x75316420]  ;;  %v271_v21 = vsel %vm112_vm1, %v261_v61, %v267_v2  ;;  %v277_v25 = vsub.f32 %v568_v11, %v269_v14  ;;  %v278_v28 = vsub.f32 %v570_v12, %v270_v15 }
  0x1f   :  { %v144_v7 = vld.sshfl [vmem:[#allocation1 + $0x20] sm:$0xff pattern:$0x75316420]  ;;  %v145_v8 = vld.sshfl [vmem:[#allocation1 + $0x28] sm:$0xff pattern:$0x75316420]  ;;  %v279_v29 = vsub.f32 %v572_v17, %v271_v21 }
  0x20   :  { %v146_v10 = vld.sshfl [vmem:[#allocation1 + $0x30] sm:$0xff pattern:$0x75316420]  ;;  %v147_v13 = vld.sshfl [vmem:[#allocation1 + $0x38] sm:$0xff pattern:$0x75316420] }
  0x21   :  { %v156_v16 = vsel %vm112_vm1, %v140_v3, 0.0  ;;  %v157_v19 = vsel %vm112_vm1, %v141_v4, 0.0  ;;  %v159_v20 = vsel %vm112_vm1, %v142_v5, 0.0  ;;  %211 = vst [vmem:[#allocation1] ss:$2 sm:$0xff] %v203_v55  ;;  %v161_v23 = vsel %vm112_vm1, %v143_v6, 0.0 }
  0x22   :  { %v158_v22 = vadd.f32 %v157_v19, %v156_v16  ;;  %213 = vst [vmem:[#allocation1 + $0x10] ss:$2 sm:$0xff] %v204_v56  ;;  %v268_v24 = vrot.slane %v264_v63, 4  ;;  %v163_v31 = vsel %vm112_vm1, %v144_v7, 0.0  ;;  %v340_v34 = vperm.slane %v333_v9, 5 }
  0x23   :  { %215 = vst [vmem:[#allocation1 + $0x20] ss:$2 sm:$0xff] %v205_v59  ;;  %v337_v37 = vperm.slane %v333_v9, 2  ;;  %v342_v38 = vperm.slane %v333_v9, 7  ;;  %v165_v39 = vsel %vm112_vm1, %v145_v8, 0.0  ;;  %v167_v40 = vsel %vm112_vm1, %v146_v10, 0.0 }
  0x24   :  { %v160_v27 = vadd.f32 %v159_v20, %v158_v22  ;;  %217 = vst [vmem:[#allocation1 + $0x30] ss:$2 sm:$0xff] %v206_v60  ;;  %v272_v32 = vsel %vm112_vm1, %v263_v62, %v268_v24  ;;  %v169_v41 = vsel %vm112_vm1, %v147_v13, 0.0  ;;  %v281_v42 = vand.u32 2147483647, %v277_v25 }
  0x25   :  { %v280_v36 = vsub.f32 %v574_v18, %v272_v32  ;;  %v282_v44 = vand.u32 2147483647, %v278_v28  ;;  %v343_v45 = vrot.slane %v336_v30, 4  ;;  %v344_v46 = vrot.slane %v338_v33, 4 }
  0x26   :  { %v162_v35 = vadd.f32 %v161_v23, %v160_v27  ;;  %v283_v47 = vand.u32 2147483647, %v279_v29  ;;  %v339_v48 = vperm.slane %v333_v9, 4  ;;  %v341_v49 = vperm.slane %v333_v9, 6 }
  0x27   :  { %v345_v50 = vrot.slane %v340_v34, 4  ;;  %v284_v52 = vand.u32 2147483647, %v280_v36  ;;  %v346_v53 = vrot.slane %v342_v38, 4  ;;  %v347_v58 = vsel %vm112_vm1, %v335_v26, %v343_v45 }
  0x28   :  { %v164_v43 = vadd.f32 %v163_v31, %v162_v35  ;;  %v218_v54 = vld.sshfl [vmem:[#allocation1] sm:$0xff pattern:$0x75316420]  ;;  %v219_v55 = vld.sshfl [vmem:[#allocation1 + $0x8] sm:$0xff pattern:$0x75316420]  ;;  %v348_v59 = vsel %vm112_vm1, %v337_v37, %v344_v46  ;;  %v355_v7 = vsub.f32 %v568_v11, %v347_v58 }
  0x29   :  { %v220_v56 = vld.sshfl [vmem:[#allocation1 + $0x10] sm:$0xff pattern:$0x75316420]  ;;  %v221_v60 = vld.sshfl [vmem:[#allocation1 + $0x18] sm:$0xff pattern:$0x75316420]  ;;  %v349_v62 = vsel %vm112_vm1, %v339_v48, %v345_v50  ;;  %v350_v3 = vsel %vm112_vm1, %v341_v49, %v346_v53  ;;  %v356_v8 = vsub.f32 %v570_v12, %v348_v59 }
  0x2a   :  { %v166_v51 = vadd.f32 %v165_v39, %v164_v43  ;;  %v234_v61 = vsel %vm112_vm1, %v218_v54, 0.0  ;;  %v222_v63 = vld.sshfl [vmem:[#allocation1 + $0x20] sm:$0xff pattern:$0x75316420]  ;;  %v235_v0 = vsel %vm112_vm1, %v219_v55, 0.0  ;;  %v237_v1 = vsel %vm112_vm1, %v220_v56, 0.0 }
  0x2b   :  { %v223_v4 = vld.sshfl [vmem:[#allocation1 + $0x28] sm:$0xff pattern:$0x75316420]  ;;  %v224_v5 = vld.sshfl [vmem:[#allocation1 + $0x30] sm:$0xff pattern:$0x75316420]  ;;  %v236_v6 = vadd.f32 %v235_v0, %v234_v61  ;;  %v357_v13 = vsub.f32 %v572_v17, %v349_v62  ;;  %v358_v15 = vsub.f32 %v574_v18, %v350_v3 }
  0x2c   :  { %v168_v57 = vadd.f32 %v167_v40, %v166_v51  ;;  %v225_v9 = vld.sshfl [vmem:[#allocation1 + $0x38] sm:$0xff pattern:$0x75316420]  ;;  %v239_v10 = vsel %vm112_vm1, %v221_v60, 0.0  ;;  %289 = vst [vmem:[#allocation1] ss:$2 sm:$0xff] %v281_v42 }
  0x2d   :  { %v238_v14 = vadd.f32 %v237_v1, %v236_v6  ;;  %291 = vst [vmem:[#allocation1 + $0x10] ss:$2 sm:$0xff] %v282_v44  ;;  %v241_v16 = vsel %vm112_vm1, %v222_v63, 0.0  ;;  %v359_v20 = vand.u32 2147483647, %v355_v7  ;;  %v243_v12 = vsel %vm112_vm1, %v223_v4, 0.0 }
  0x2e   :  { %v170_v2 = vadd.f32 %v169_v41, %v168_v57  ;;  %293 = vst [vmem:[#allocation1 + $0x20] ss:$2 sm:$0xff] %v283_v47  ;;  %v360_v11 = vand.u32 2147483647, %v356_v8  ;;  %v361_v21 = vand.u32 2147483647, %v357_v13 }
  0x2f   :  { %v240_v19 = vadd.f32 %v239_v10, %v238_v14  ;;  %295 = vst [vmem:[#allocation1 + $0x30] ss:$2 sm:$0xff] %v284_v52  ;;  %vm44_vm2 = vcmask 27648   ;;  %v362_v23 = vand.u32 2147483647, %v358_v15  ;;  %v245_v17 = vsel %vm112_vm1, %v224_v5, 0.0 }
  0x30   :  { %171 = vadd.xlane.f32.xlu0 %v170_v2  ;;  %v247_v24 = vsel %vm112_vm1, %v225_v9, 0.0  ;;  %v545_v25 = vmov 0.0   ;;  %v71_v10 = vlaneseq  ;;  %vm435_vm8 = vcmask 0  }
  0x31   :  { %v242_v22 = vadd.f32 %v241_v16, %v240_v19  ;;  %45 = vst.msk [vmem:[#allocation3] sm:$0xf] %vm44_vm2, %v545_v25 }
  0x32   :  { %v72_v13 = vshrl.u32 %v71_v10, 7  ;;  %v74_v14 = vand.u32 127, %v71_v10 }
  0x33   :  { %v244_v18 = vadd.f32 %v243_v12, %v242_v22  ;;  %v296_v26 = vld.sshfl [vmem:[#allocation1] sm:$0xff pattern:$0x75316420]  ;;  %v297_v27 = vld.sshfl [vmem:[#allocation1 + $0x8] sm:$0xff pattern:$0x75316420] }
  0x34   :  { %v298_v28 = vld.sshfl [vmem:[#allocation1 + $0x10] sm:$0xff pattern:$0x75316420]  ;;  %v299_v29 = vld.sshfl [vmem:[#allocation1 + $0x18] sm:$0xff pattern:$0x75316420]  ;;  %vm75_vm3 = vcmp.eq.s32.totalorder %v72_v13, %v74_v14 }
  0x35   :  { %v246_v30 = vadd.f32 %v245_v17, %v244_v18  ;;  %v300_v31 = vld.sshfl [vmem:[#allocation1 + $0x20] sm:$0xff pattern:$0x75316420]  ;;  %v301_v32 = vld.sshfl [vmem:[#allocation1 + $0x28] sm:$0xff pattern:$0x75316420] }
  0x36   :  { %v302_v33 = vld.sshfl [vmem:[#allocation1 + $0x30] sm:$0xff pattern:$0x75316420]  ;;  %v303_v34 = vld.sshfl [vmem:[#allocation1 + $0x38] sm:$0xff pattern:$0x75316420] }
  0x37   :  { %v248_v35 = vadd.f32 %v247_v24, %v246_v30  ;;  %v312_v36 = vsel %vm112_vm1, %v296_v26, 0.0  ;;  %v313_v37 = vsel %vm112_vm1, %v297_v27, 0.0  ;;  %v315_v38 = vsel %vm112_vm1, %v298_v28, 0.0  ;;  %367 = vst [vmem:[#allocation1] ss:$2 sm:$0xff] %v359_v20 }
  0x38   :  { %v314_v39 = vadd.f32 %v313_v37, %v312_v36  ;;  %369 = vst [vmem:[#allocation1 + $0x10] ss:$2 sm:$0xff] %v360_v11  ;;  %v317_v40 = vsel %vm112_vm1, %v299_v29, 0.0  ;;  %v319_v42 = vsel %vm112_vm1, %v300_v31, 0.0  ;;  %v321_v44 = vsel %vm112_vm1, %v301_v32, 0.0 }
  0x39   :  { %249 = vadd.xlane.f32.xlu0 %v248_v35  ;;  %371 = vst [vmem:[#allocation1 + $0x20] ss:$2 sm:$0xff] %v361_v21  ;;  %v323_v46 = vsel %vm112_vm1, %v302_v33, 0.0  ;;  %v325_v51 = vsel %vm112_vm1, %v303_v34, 0.0  ;;  %vm173_vm4 = vcmp.eq.s32.totalorder %v74_v14, 0  ;;  %vm251_vm5 = vcmp.eq.s32.totalorder %v74_v14, 1 }
  0x3a   :  { %v316_v41 = vadd.f32 %v315_v38, %v314_v39  ;;  %373 = vst [vmem:[#allocation1 + $0x30] ss:$2 sm:$0xff] %v362_v23  ;;  %vm329_vm6 = vcmp.eq.s32.totalorder %v74_v14, 2  ;;  %vm407_vm7 = vcmp.eq.s32.totalorder %v74_v14, 3  ;;  %v410_v27 = vld [vmem:[#allocation3] sm:$0xf] }
  0x3c   :  { %v318_v43 = vadd.f32 %v317_v40, %v316_v41 }
  0x3e   :  { %v320_v45 = vadd.f32 %v319_v42, %v318_v43  ;;  %v374_v47 = vld.sshfl [vmem:[#allocation1] sm:$0xff pattern:$0x75316420]  ;;  %v375_v48 = vld.sshfl [vmem:[#allocation1 + $0x8] sm:$0xff pattern:$0x75316420] }
  0x3f   :  { %v376_v49 = vld.sshfl [vmem:[#allocation1 + $0x10] sm:$0xff pattern:$0x75316420]  ;;  %v377_v52 = vld.sshfl [vmem:[#allocation1 + $0x18] sm:$0xff pattern:$0x75316420] }
  0x40   :  { %v322_v50 = vadd.f32 %v321_v44, %v320_v45  ;;  %v390_v54 = vsel %vm112_vm1, %v374_v47, 0.0  ;;  %v391_v55 = vsel %vm112_vm1, %v375_v48, 0.0  ;;  %v393_v56 = vsel %vm112_vm1, %v376_v49, 0.0  ;;  %v378_v57 = vld.sshfl [vmem:[#allocation1 + $0x20] sm:$0xff pattern:$0x75316420] }
  0x41   :  { %v392_v58 = vadd.f32 %v391_v55, %v390_v54  ;;  %v395_v60 = vsel %vm112_vm1, %v377_v52, 0.0  ;;  %v379_v61 = vld.sshfl [vmem:[#allocation1 + $0x28] sm:$0xff pattern:$0x75316420]  ;;  %v397_v63 = vsel %vm112_vm1, %v378_v57, 0.0 }
  0x42   :  { %v324_v53 = vadd.f32 %v323_v46, %v322_v50  ;;  %v380_v0 = vld.sshfl [vmem:[#allocation1 + $0x30] sm:$0xff pattern:$0x75316420]  ;;  %v399_v2 = vsel %vm112_vm1, %v379_v61, 0.0 }
  0x43   :  { %v394_v62 = vadd.f32 %v393_v56, %v392_v58  ;;  %v381_v3 = vld.sshfl [vmem:[#allocation1 + $0x38] sm:$0xff pattern:$0x75316420]  ;;  %v401_v5 = vsel %vm112_vm1, %v380_v0, 0.0 }
  0x44   :  { %v326_v59 = vadd.f32 %v325_v51, %v324_v53  ;;  %v403_v7 = vsel %vm112_vm1, %v381_v3, 0.0 }
  0x45   :  { %v396_v1 = vadd.f32 %v395_v60, %v394_v62 }
  0x46   :  { %327 = vadd.xlane.f32.xlu1 %v326_v59 }
  0x47   :  { %v398_v4 = vadd.f32 %v397_v63, %v396_v1 }
  0x49   :  { %v400_v6 = vadd.f32 %v399_v2, %v398_v4 }
  0x4b   :  { %v402_v8 = vadd.f32 %v401_v5, %v400_v6 }
  0x4d   :  { %v404_v9 = vadd.f32 %v403_v7, %v402_v8 }
  0x4f   :  { %405 = vadd.xlane.f32.xlu2 %v404_v9 }
  0x8c   :  { %v68_v15 = vpop.f32.mrf.mxu0 }
  0x8d   :  { %v76_v16 = vsel %vm75_vm3, %v68_v15, 0.0  ;;  %v87_v37 = vmul.f32 2.0, %v68_v15 }
  0x8e   :  { %v77_v19 = vsel %vm44_vm2, %v76_v16, 0.0 }
  0x8f   :  { %78 = vadd.xlane.f32.xlu1 %v77_v19  ;;  %v80_v30 = vrot.slane %v77_v19, 4 }
  0x91   :  { %v81_v31 = vadd.f32 %v80_v30, %v77_v19 }
  0x93   :  { %v82_v32 = vrot.slane %v81_v31, 2 }
  0x95   :  { %v83_v33 = vadd.f32 %v82_v32, %v81_v31 }
  0x97   :  { %v84_v34 = vrot.slane %v83_v33, 1 }
  0x99   :  { %v85_v35 = vadd.f32 %v84_v34, %v83_v33 }
  0xa3   :  { %v172_v20 = vpop.xlane.xlu0 %171 }
  0xa4   :  { %v174_v12 = vsel %vm173_vm4, %v172_v20, 0.0 }
  0xac   :  { %v250_v11 = vpop.xlane.xlu0 %249 }
  0xad   :  { %v252_v21 = vsel %vm251_vm5, %v250_v11, 0.0 }
  0xae   :  { %v253_v23 = vadd.f32 %v252_v21, %v174_v12 }
  0xb9   :  { %v328_v22 = vpop.xlane.xlu1 %327 }
  0xba   :  { %v330_v17 = vsel %vm329_vm6, %v328_v22, 0.0 }
  0xbb   :  { %v331_v24 = vadd.f32 %v330_v17, %v253_v23 }
  0xc2   :  { %v406_v25 = vpop.xlane.xlu2 %405 }
  0xc3   :  { %v408_v18 = vsel %vm407_vm7, %v406_v25, 0.0 }
  0xc4   :  { %v409_v26 = vadd.f32 %v408_v18, %v331_v24 }
  0xc6   :  { %v411_v28 = vmul.f32 0.0009765625, %v409_v26 }
  0xc8   :  { %v412_v29 = vadd.f32 %v411_v28, %v410_v27 }
  0xca   :  { %414 = vst.msk [vmem:[#allocation3] sm:$0xf] %vm44_vm2, %v412_v29 }
  0xd1   :  { %v418_v42 = vld [vmem:[#allocation3] sm:$0xf] }
 0x102   :  { %v79_v36 = vpop.xlane.xlu1 %78 }
 0x103   :  { %v86_v38 = vadd.f32 %v85_v35, %v79_v36 }
 0x105   :  { %v88_v39 = vsub.f32 %v86_v38, %v87_v37 }
 0x107   :  { %v89_v40 = vmax.f32 %v88_v39, 0.0 }
 0x109   :  { %v90_v41 = vmul.f32 0.125, %v89_v40 }
 0x10b   :  { %91 = vst.msk [vmem:[#allocation2] sm:$0xf] %vm44_vm2, %v90_v41 }
 0x112   :  { %v419_v43 = vld [vmem:[#allocation2] sm:$0xf] }
 0x113   :  { %v420_v44 = vmul.f32 %v419_v43, %v418_v42 }
 0x115   :  { %v421_v45 = vsel %vm44_vm2, %v420_v44, 0.0 }
 0x116   :  { %422 = vadd.xlane.f32.xlu2 %v421_v45 }
 0x189   :  { %v423_v46 = vpop.xlane.xlu2 %422 }
 0x18a   :  { %v424_v47 = vrot.slane %v423_v46, 4 }
 0x18c   :  { %v425_v48 = vadd.f32 %v424_v47, %v423_v46 }
 0x18e   :  { %v426_v49 = vrot.slane %v425_v48, 2 }
 0x190   :  { %v427_v50 = vadd.f32 %v426_v49, %v425_v48 }
 0x192   :  { %v428_v51 = vrot.slane %v427_v50, 1 }
 0x194   :  { %v429_v52 = vadd.f32 %v428_v51, %v427_v50 }
 0x196   :  { %457 = vpush %v429_v52 }
 0x1c7   :  { %s458_s0 = spop %457 }
 0x1c8   :  { %v431_v53 = vstv %s458_s0 }
 0x1c9   :  { %v432_v54 = vmul.f32 -0.0625, %v431_v53 }
 0x1cb   :  { %v433_v55 = vmul.f32 1.442695, %v432_v54 }
 0x1cd   :  { %463 = vpow2.f32 %v433_v55 }
 0x1d3   :  { %v464_v56 = vpop.eup %463 }
 0x1d4   :  { %436 = vst.msk [vmem:[#allocation9] sm:$0x1] %vm435_vm8, %v464_v56 }
 0x1d5   :  { %447 = dma.vmem_to_hbm [thread:$0]  %s443_s19, 16, %s445_s22, [#allocation6]  }
 0x1d6   :  { %541 = dma.done.wait [#allocation6], 16  }
 0x1d7   :  { %542 = vsyncadd [#allocation6], 4294967280 }
 0x1d8   :  { %452 = vsyncpa [#allocation5], 1 }
 0x1d9   :  { %453 = vsyncpa [#allocation8], 1 }
 0x1da   :  { %454 = vsyncpa [#allocation6], 1 }

</bundles_post_ra>
